<compile_context>
chip_gen: v5e
topology: v5e:2x2
jax: 0.10.0
libtpu: 0.0.40
codegen_flags: <defaults>
</compile_context>

<pallas_src>
import functools

import jax
import jax.numpy as jnp
from jax.experimental import pallas as pl
from jax.experimental.pallas import tpu as pltpu

X_dim = 11
Z_dim = 11
h_dim = 256
EPS = 1e-5

OUT_PAD = 128                    # lane-dense output slab (small-batch fused path only)
SMALL_BATCH_MAX = 1024           # fused single-shot path up to this many rows
DEFAULT_TILE_ROWS = 512          # batch tile for the large-B pipelined path
VMEM_LIMIT = 32 * 1024 * 1024    # explicit scoped-VMEM limit (raises v5e's 16 MiB default)

VMEM = pl.BlockSpec(memory_space=pltpu.VMEM)
SMEM = pl.BlockSpec(memory_space=pltpu.MemorySpace.SMEM)


def _round_up(n, m):
    return (n + m - 1) // m * m


# ---------------------------------------------------------------------------
# Small-batch path: whole forward in one invocation (everything fits in VMEM).
# ---------------------------------------------------------------------------
def _fused_kernel(x_ref,
                  w1_ref, g1_ref, bb1_ref, a1_ref,
                  w2_ref, g2_ref, bb2_ref, a2_ref,
                  w3_ref, b3_ref, o_ref):
    inv_n = 1.0 / x_ref.shape[0]

    def bn_prelu(h, gamma, beta, alpha):
        # One-sweep batch statistics: E[h], E[h^2]; var = E[h^2] - E[h]^2.
        mean = jnp.sum(h, axis=0, keepdims=True) * inv_n
        var = jnp.maximum(jnp.sum(h * h, axis=0, keepdims=True) * inv_n - mean * mean, 0.0)
        scale = gamma * jax.lax.rsqrt(var + EPS)        # gamma folded into rsqrt scale
        shift = beta - mean * scale                     # mean folded into shift -> single FMA apply
        hn = h * scale + shift
        return jnp.where(hn > 0, hn, alpha * hn)        # PReLU (single shared parameter)

    # Linear biases b1/b2 are cancelled by the batch-stat BatchNorm -> dropped.
    x16 = x_ref[...].astype(jnp.bfloat16)
    h = bn_prelu(jnp.dot(x16, w1_ref[...], preferred_element_type=jnp.float32),
                 g1_ref[...], bb1_ref[...], a1_ref[0])
    h = bn_prelu(jnp.dot(h.astype(jnp.bfloat16), w2_ref[...],
                         preferred_element_type=jnp.float32),
                 g2_ref[...], bb2_ref[...], a2_ref[0])
    y = jnp.dot(h.astype(jnp.bfloat16), w3_ref[...],
                preferred_element_type=jnp.float32) + b3_ref[...]
    o_ref[...] = jax.nn.sigmoid(y)


def latternet_forward_fused(x, params):
    B = x.shape[0]
    args = (x,
            params["w1"], params["g1"], params["bb1"], params["a1"],
            params["w2"], params["g2"], params["bb2"], params["a2"],
            params["w3_pad"], params["b3_pad"])
    in_specs = [VMEM,
                VMEM, VMEM, VMEM, SMEM,     # layer 1 (+ PReLU scalar in SMEM)
                VMEM, VMEM, VMEM, SMEM,     # layer 2
                VMEM, VMEM]                 # layer 3 (pre-padded at init time)
    out = pl.pallas_call(
        _fused_kernel,
        out_shape=jax.ShapeDtypeStruct((B, OUT_PAD), jnp.float32),
        in_specs=in_specs,
        out_specs=VMEM,
        compiler_params=pltpu.CompilerParams(vmem_limit_bytes=VMEM_LIMIT),
    )(*args)
    return out[:, :X_dim]


# ---------------------------------------------------------------------------
# Large-batch path: batch-tiled three-pass pipeline with two-phase BatchNorm.
# ---------------------------------------------------------------------------
def _l1_stats_kernel(x_ref, w1_ref, h1_ref, s1_ref, q1_ref):
    # Pass 1: h1 = x @ W1 (bias cancelled by BN); accumulate BN1 sum / sum-sq.
    @pl.when(pl.program_id(0) == 0)
    def _():
        s1_ref[...] = jnp.zeros_like(s1_ref)
        q1_ref[...] = jnp.zeros_like(q1_ref)

    h = jnp.dot(x_ref[...], w1_ref[...], preferred_element_type=jnp.float32)
    hq = h.astype(jnp.bfloat16)           # bf16 inter-layer activations halve HBM traffic
    h1_ref[...] = hq
    hf = hq.astype(jnp.float32)           # statistics over exactly what BN will normalize
    s1_ref[...] += jnp.sum(hf, axis=0, keepdims=True)
    q1_ref[...] += jnp.sum(hf * hf, axis=0, keepdims=True)
    # NOTE: padded batch rows of x are zero and there is no bias, so they
    # contribute exactly zero to these sums.


def _l2_stats_kernel(nrows_ref, a1_ref, h1_ref, scale1_ref, shift1_ref, w2_ref,
                     h2_ref, s2_ref, q2_ref, *, tile_rows):
    # Pass 2: BN1 apply (single FMA) + PReLU + layer-2 matmul; accumulate BN2 stats.
    i = pl.program_id(0)

    @pl.when(i == 0)
    def _():
        s2_ref[...] = jnp.zeros_like(s2_ref)
        q2_ref[...] = jnp.zeros_like(q2_ref)

    h = h1_ref[...].astype(jnp.float32)
    hn = h * scale1_ref[...] + shift1_ref[...]
    act = jnp.where(hn > 0, hn, a1_ref[0] * hn)
    # Zero padded batch rows so they contribute nothing to layer-2 statistics.
    row = i * tile_rows + jax.lax.broadcasted_iota(jnp.int32, (tile_rows, 1), 0)
    act = jnp.where(row < nrows_ref[0], act, 0.0)

    h2 = jnp.dot(act.astype(jnp.bfloat16), w2_ref[...],
                 preferred_element_type=jnp.float32)
    h2q = h2.astype(jnp.bfloat16)
    h2_ref[...] = h2q
    h2f = h2q.astype(jnp.float32)
    s2_ref[...] += jnp.sum(h2f, axis=0, keepdims=True)
    q2_ref[...] += jnp.sum(h2f * h2f, axis=0, keepdims=True)


def _l3_kernel(a2_ref, h2_ref, scale2_ref, shift2_ref, w3_ref, b3_ref, o_ref):
    # Pass 3: BN2 apply + PReLU + layer-3 matmul + bias + sigmoid.
    # Dense (tile, 11) output: lane-masked stores, but ~11x less HBM writeback
    # than a 128-wide f32 slab and no external slice of a padded slab.
    h = h2_ref[...].astype(jnp.float32)
    hn = h * scale2_ref[...] + shift2_ref[...]
    act = jnp.where(hn > 0, hn, a2_ref[0] * hn)
    y = jnp.dot(act.astype(jnp.bfloat16), w3_ref[...],
                preferred_element_type=jnp.float32) + b3_ref[...]
    o_ref[...] = jax.nn.sigmoid(y)


def _bn_scale_shift(s, q, n, gamma, beta):
    # Tiny (1,256) glue between passes (fused under jit).
    mean = s / n
    var = jnp.maximum(q / n - mean * mean, 0.0)
    scale = gamma * jax.lax.rsqrt(var + EPS)
    shift = beta - mean * scale
    return scale, shift


def latternet_forward_tiled(x, params, tile_rows=DEFAULT_TILE_ROWS):
    B = x.shape[0]
    TB = min(tile_rows, _round_up(B, 8))
    B_pad = _round_up(B, TB)
    n_tiles = B_pad // TB

    xb = x.astype(jnp.bfloat16)
    if B_pad != B:
        xb = jnp.pad(xb, ((0, B_pad - B), (0, 0)))
    nrows = jnp.array([B], jnp.int32)

    row_spec = lambda shape: pl.BlockSpec(shape, lambda i: (i, 0))   # per-tile blocks
    fix_spec = lambda shape: pl.BlockSpec(shape, lambda i: (0, 0))   # resident (DMA'd once)
    cparams_red = pltpu.CompilerParams(dimension_semantics=("arbitrary",),
                                       vmem_limit_bytes=VMEM_LIMIT)
    cparams_par = pltpu.CompilerParams(dimension_semantics=("parallel",),
                                       vmem_limit_bytes=VMEM_LIMIT)

    # Pass 1: layer-1 matmul + BN1 statistics (batch axis is a reduction -> arbitrary).
    h1, s1, q1 = pl.pallas_call(
        _l1_stats_kernel,
        grid=(n_tiles,),
        in_specs=[row_spec((TB, Z_dim)), fix_spec((Z_dim, h_dim))],
        out_specs=(row_spec((TB, h_dim)), fix_spec((1, h_dim)), fix_spec((1, h_dim))),
        out_shape=(jax.ShapeDtypeStruct((B_pad, h_dim), jnp.bfloat16),
                   jax.ShapeDtypeStruct((1, h_dim), jnp.float32),
                   jax.ShapeDtypeStruct((1, h_dim), jnp.float32)),
        compiler_params=cparams_red,
    )(xb, params["w1"])
    scale1, shift1 = _bn_scale_shift(s1, q1, float(B), params["g1"], params["bb1"])

    # Pass 2: BN1 apply + PReLU + layer-2 matmul + BN2 statistics.
    h2, s2, q2 = pl.pallas_call(
        functools.partial(_l2_stats_kernel, tile_rows=TB),
        grid=(n_tiles,),
        in_specs=[SMEM, SMEM,
                  row_spec((TB, h_dim)), fix_spec((1, h_dim)), fix_spec((1, h_dim)),
                  fix_spec((h_dim, h_dim))],
        out_specs=(row_spec((TB, h_dim)), fix_spec((1, h_dim)), fix_spec((1, h_dim))),
        out_shape=(jax.ShapeDtypeStruct((B_pad, h_dim), jnp.bfloat16),
                   jax.ShapeDtypeStruct((1, h_dim), jnp.float32),
                   jax.ShapeDtypeStruct((1, h_dim), jnp.float32)),
        compiler_params=cparams_red,
    )(nrows, params["a1"], h1, scale1, shift1, params["w2"])
    scale2, shift2 = _bn_scale_shift(s2, q2, float(B), params["g2"], params["bb2"])

    # Pass 3: BN2 apply + PReLU + layer-3 matmul + sigmoid (no accumulator ->
    # batch axis 'parallel': sharded across v7x's two TensorCores).
    out = pl.pallas_call(
        _l3_kernel,
        grid=(n_tiles,),
        in_specs=[SMEM,
                  row_spec((TB, h_dim)), fix_spec((1, h_dim)), fix_spec((1, h_dim)),
                  fix_spec((h_dim, X_dim)), fix_spec((1, X_dim))],
        out_specs=row_spec((TB, X_dim)),
        out_shape=jax.ShapeDtypeStruct((B_pad, X_dim), jnp.float32),
        compiler_params=cparams_par,
    )(params["a2"], h2, scale2, shift2, params["w3"], params["b3"])
    return out[:B]


def latternet_forward(x, params, tile_rows=DEFAULT_TILE_ROWS):
    if x.shape[0] <= SMALL_BATCH_MAX:
        return latternet_forward_fused(x, params)
    return latternet_forward_tiled(x, params, tile_rows=tile_rows)


# ---------------------------------------------------------------------------
# Parameters (all kernel-side prep done ONCE here, not per forward call).
# ---------------------------------------------------------------------------
def init_params(key):
    f32 = jnp.float32
    ks = jax.random.split(key, 3)

    def lin(k, fan_in, fan_out):
        # PyTorch Linear default init: U(-1/sqrt(fan_in), 1/sqrt(fan_in)).
        kw, kb = jax.random.split(k)
        bound = 1.0 / jnp.sqrt(f32(fan_in))
        w = jax.random.uniform(kw, (fan_in, fan_out), f32, -bound, bound)
        b = jax.random.uniform(kb, (1, fan_out), f32, -bound, bound)
        return w, b

    w1, b1 = lin(ks[0], Z_dim, h_dim)
    w2, b2 = lin(ks[1], h_dim, h_dim)
    w3, b3 = lin(ks[2], h_dim, X_dim)

    # bf16 MXU operands; last layer also pre-padded to a lane-dense 128-wide
    # slab for the small-batch fused path.
    w3_pad = jnp.zeros((h_dim, OUT_PAD), f32).at[:, :X_dim].set(w3).astype(jnp.bfloat16)
    b3_pad = jnp.zeros((1, OUT_PAD), f32).at[:, :X_dim].set(b3)

    return {
        # kernel parameters
        "w1": w1.astype(jnp.bfloat16), "w2": w2.astype(jnp.bfloat16),
        "w3": w3.astype(jnp.bfloat16), "b3": b3,
        "w3_pad": w3_pad, "b3_pad": b3_pad,
        "g1": jnp.ones((1, h_dim), f32), "bb1": jnp.zeros((1, h_dim), f32),
        "a1": jnp.full((1,), 0.25, f32),
        "g2": jnp.ones((1, h_dim), f32), "bb2": jnp.zeros((1, h_dim), f32),
        "a2": jnp.full((1,), 0.25, f32),
        # f32 masters + cancelled biases, kept only for the exact reference
        "w1_f32": w1, "w2_f32": w2, "w3_f32": w3, "b1": b1, "b2": b2,
    }


# ---------------------------------------------------------------------------
# References.
# ---------------------------------------------------------------------------
def reference_forward_exact(x, p):
    # Exact PyTorch train-mode formulation in f32, INCLUDING the b1/b2 bias
    # adds the kernel drops (they cancel under batch-stat BatchNorm).
    def bn(h, gamma, beta):
        mean = jnp.mean(h, axis=0, keepdims=True)
        var = jnp.mean((h - mean) * (h - mean), axis=0, keepdims=True)
        return (h - mean) * jax.lax.rsqrt(var + EPS) * gamma + beta

    def prelu(h, a):
        return jnp.where(h > 0, h, a * h)

    h = x @ p["w1_f32"] + p["b1"]
    h = prelu(bn(h, p["g1"], p["bb1"]), p["a1"][0])
    h = h @ p["w2_f32"] + p["b2"]
    h = prelu(bn(h, p["g2"], p["bb2"]), p["a2"][0])
    return jax.nn.sigmoid(h @ p["w3_f32"] + p["b3"])


def reference_forward_matched(x, p, quantize_hidden):
    # Mirrors the kernel numerics (bf16 matmul operands, one-pass variance,
    # folded scale/shift, optional bf16 inter-layer activations) for a tight check.
    n = x.shape[0]

    def dot16(a, w):
        return jnp.dot(a.astype(jnp.bfloat16), w, preferred_element_type=jnp.float32)

    def q(h):
        return h.astype(jnp.bfloat16).astype(jnp.float32) if quantize_hidden else h

    def bn_prelu(h, gamma, beta, alpha):
        mean = jnp.sum(h, axis=0, keepdims=True) / n
        var = jnp.maximum(jnp.sum(h * h, axis=0, keepdims=True) / n - mean * mean, 0.0)
        scale = gamma * jax.lax.rsqrt(var + EPS)
        shift = beta - mean * scale
        hn = h * scale + shift
        return jnp.where(hn > 0, hn, alpha * hn)

    h = bn_prelu(q(dot16(x, p["w1"])), p["g1"], p["bb1"], p["a1"][0])
    h = bn_prelu(q(dot16(h, p["w2"])), p["g2"], p["bb2"], p["a2"][0])
    return jax.nn.sigmoid(dot16(h, p["w3"]) + p["b3"])


if __name__ == "__main__":
    key = jax.random.PRNGKey(0)
    k_param, k_x1, k_x2 = jax.random.split(key, 3)
    params = init_params(k_param)

    # --- small batch: fused single-invocation path -------------------------
    B_small = 8  # >= 2 required for BatchNorm batch statistics
    x_small = jax.random.normal(k_x1, (B_small, Z_dim), jnp.float32)
    out_small = jax.block_until_ready(jax.jit(latternet_forward)(x_small, params))
    assert out_small.shape == (B_small, X_dim)
    # Tight check vs a reference that mirrors the kernel numerics.
    ref_m = reference_forward_matched(x_small, params, quantize_hidden=False)
    assert jnp.allclose(out_small, ref_m, atol=5e-4, rtol=1e-3), "fused: numerics mismatch"
    # Loose check vs the exact f32 PyTorch-semantics reference (bf16 MXU operands).
    ref_e = reference_forward_exact(x_small, params)
    assert jnp.allclose(out_small, ref_e, atol=5e-2), "fused: semantics mismatch"

    # --- larger batch: batch-tiled three-pass pipeline ---------------------
    # (small tile forced so the grid, accumulators and row masking are
    #  exercised at test size; production default is 512-row tiles)
    B_big = 500
    x_big = jax.random.normal(k_x2, (B_big, Z_dim), jnp.float32)
    tiled_fn = jax.jit(functools.partial(latternet_forward_tiled, tile_rows=128))
    out_big = jax.block_until_ready(tiled_fn(x_big, params))
    assert out_big.shape == (B_big, X_dim)
    ref_m_big = reference_forward_matched(x_big, params, quantize_hidden=True)
    assert jnp.allclose(out_big, ref_m_big, atol=5e-4, rtol=1e-3), "tiled: numerics mismatch"
    ref_e_big = reference_forward_exact(x_big, params)
    assert jnp.allclose(out_big, ref_e_big, atol=5e-2), "tiled: semantics mismatch"

    print("KERNEL_OK")
</pallas_src>

<mosaic_0001>
module attributes {stable_mosaic.version = 11 : i64} {
  func.func @_fused_kernel(%arg0: memref<8x11xf32, #tpu.memory_space<vmem>>, %arg1: memref<11x256xbf16, #tpu.memory_space<vmem>>, %arg2: memref<1x256xf32, #tpu.memory_space<vmem>>, %arg3: memref<1x256xf32, #tpu.memory_space<vmem>>, %arg4: memref<1xf32, #tpu.memory_space<smem>>, %arg5: memref<256x256xbf16, #tpu.memory_space<vmem>>, %arg6: memref<1x256xf32, #tpu.memory_space<vmem>>, %arg7: memref<1x256xf32, #tpu.memory_space<vmem>>, %arg8: memref<1xf32, #tpu.memory_space<smem>>, %arg9: memref<256x128xbf16, #tpu.memory_space<vmem>>, %arg10: memref<1x128xf32, #tpu.memory_space<vmem>>, %arg11: memref<8x128xf32, #tpu.memory_space<vmem>>) attributes {dimension_semantics = [], scalar_prefetch = 0 : i64, scratch_operands = 0 : i64, tpu.core_type = #tpu.core_type<tc>} {
    %c0 = arith.constant 0 : index
    %c0_0 = arith.constant 0 : index
    %0 = vector.load %arg0[%c0, %c0_0] : memref<8x11xf32, #tpu.memory_space<vmem>>, vector<8x11xf32>
    %1 = arith.truncf %0 : vector<8x11xf32> to vector<8x11xbf16>
    %c0_1 = arith.constant 0 : index
    %c0_2 = arith.constant 0 : index
    %2 = vector.load %arg1[%c0_1, %c0_2] : memref<11x256xbf16, #tpu.memory_space<vmem>>, vector<11x256xbf16>
    %cst = arith.constant dense<0.000000e+00> : vector<8x256xf32>
    %3 = tpu.matmul %1, %2, %cst {dimension_numbers = #tpu.dot_dimension_numbers<[1], [0], [0], [1], [0, 0, 1, 1], [], []>} : vector<8x11xbf16>, vector<11x256xbf16>, vector<8x256xf32> -> vector<8x256xf32>
    %c0_3 = arith.constant 0 : index
    %c0_4 = arith.constant 0 : index
    %4 = vector.load %arg2[%c0_3, %c0_4] : memref<1x256xf32, #tpu.memory_space<vmem>>, vector<1x256xf32>
    %c0_5 = arith.constant 0 : index
    %c0_6 = arith.constant 0 : index
    %5 = vector.load %arg3[%c0_5, %c0_6] : memref<1x256xf32, #tpu.memory_space<vmem>>, vector<1x256xf32>
    %c0_7 = arith.constant 0 : index
    %6 = memref.load %arg4[%c0_7] : memref<1xf32, #tpu.memory_space<smem>>
    %cst_8 = arith.constant dense<0.000000e+00> : vector<256xf32>
    %7 = vector.multi_reduction <add>, %3, %cst_8 [0] : vector<8x256xf32> to vector<256xf32>
    %8 = vector.shape_cast %7 : vector<256xf32> to vector<1x256xf32>
    %cst_9 = arith.constant 1.250000e-01 : f32
    %9 = vector.broadcast %cst_9 : f32 to vector<1x256xf32>
    %10 = arith.mulf %8, %9 : vector<1x256xf32>
    %11 = arith.mulf %3, %3 : vector<8x256xf32>
    %cst_10 = arith.constant dense<0.000000e+00> : vector<256xf32>
    %12 = vector.multi_reduction <add>, %11, %cst_10 [0] : vector<8x256xf32> to vector<256xf32>
    %13 = vector.shape_cast %12 : vector<256xf32> to vector<1x256xf32>
    %cst_11 = arith.constant 1.250000e-01 : f32
    %14 = vector.broadcast %cst_11 : f32 to vector<1x256xf32>
    %15 = arith.mulf %13, %14 : vector<1x256xf32>
    %16 = arith.mulf %10, %10 : vector<1x256xf32>
    %17 = arith.subf %15, %16 : vector<1x256xf32>
    %cst_12 = arith.constant 0.000000e+00 : f32
    %18 = vector.broadcast %cst_12 : f32 to vector<1x256xf32>
    %19 = arith.maximumf %17, %18 : vector<1x256xf32>
    %cst_13 = arith.constant 9.99999974E-6 : f32
    %20 = vector.broadcast %cst_13 : f32 to vector<1x256xf32>
    %21 = arith.addf %19, %20 : vector<1x256xf32>
    %22 = math.rsqrt %21 : vector<1x256xf32>
    %23 = arith.mulf %4, %22 : vector<1x256xf32>
    %24 = arith.mulf %10, %23 : vector<1x256xf32>
    %25 = arith.subf %5, %24 : vector<1x256xf32>
    %26 = vector.broadcast %23 : vector<1x256xf32> to vector<8x256xf32>
    %27 = arith.mulf %3, %26 : vector<8x256xf32>
    %28 = vector.broadcast %25 : vector<1x256xf32> to vector<8x256xf32>
    %29 = arith.addf %27, %28 : vector<8x256xf32>
    %cst_14 = arith.constant 0.000000e+00 : f32
    %30 = vector.broadcast %cst_14 : f32 to vector<8x256xf32>
    %31 = arith.cmpf ogt, %29, %30 : vector<8x256xf32>
    %32 = vector.broadcast %6 : f32 to vector<8x256xf32>
    %33 = arith.mulf %32, %29 : vector<8x256xf32>
    %34 = arith.select %31, %29, %33 : vector<8x256xi1>, vector<8x256xf32>
    %35 = arith.truncf %34 : vector<8x256xf32> to vector<8x256xbf16>
    %c0_15 = arith.constant 0 : index
    %c0_16 = arith.constant 0 : index
    %36 = vector.load %arg5[%c0_15, %c0_16] : memref<256x256xbf16, #tpu.memory_space<vmem>>, vector<256x256xbf16>
    %cst_17 = arith.constant dense<0.000000e+00> : vector<8x256xf32>
    %37 = tpu.matmul %35, %36, %cst_17 {dimension_numbers = #tpu.dot_dimension_numbers<[1], [0], [0], [1], [0, 0, 1, 1], [], []>} : vector<8x256xbf16>, vector<256x256xbf16>, vector<8x256xf32> -> vector<8x256xf32>
    %c0_18 = arith.constant 0 : index
    %c0_19 = arith.constant 0 : index
    %38 = vector.load %arg6[%c0_18, %c0_19] : memref<1x256xf32, #tpu.memory_space<vmem>>, vector<1x256xf32>
    %c0_20 = arith.constant 0 : index
    %c0_21 = arith.constant 0 : index
    %39 = vector.load %arg7[%c0_20, %c0_21] : memref<1x256xf32, #tpu.memory_space<vmem>>, vector<1x256xf32>
    %c0_22 = arith.constant 0 : index
    %40 = memref.load %arg8[%c0_22] : memref<1xf32, #tpu.memory_space<smem>>
    %cst_23 = arith.constant dense<0.000000e+00> : vector<256xf32>
    %41 = vector.multi_reduction <add>, %37, %cst_23 [0] : vector<8x256xf32> to vector<256xf32>
    %42 = vector.shape_cast %41 : vector<256xf32> to vector<1x256xf32>
    %cst_24 = arith.constant 1.250000e-01 : f32
    %43 = vector.broadcast %cst_24 : f32 to vector<1x256xf32>
    %44 = arith.mulf %42, %43 : vector<1x256xf32>
    %45 = arith.mulf %37, %37 : vector<8x256xf32>
    %cst_25 = arith.constant dense<0.000000e+00> : vector<256xf32>
    %46 = vector.multi_reduction <add>, %45, %cst_25 [0] : vector<8x256xf32> to vector<256xf32>
    %47 = vector.shape_cast %46 : vector<256xf32> to vector<1x256xf32>
    %cst_26 = arith.constant 1.250000e-01 : f32
    %48 = vector.broadcast %cst_26 : f32 to vector<1x256xf32>
    %49 = arith.mulf %47, %48 : vector<1x256xf32>
    %50 = arith.mulf %44, %44 : vector<1x256xf32>
    %51 = arith.subf %49, %50 : vector<1x256xf32>
    %cst_27 = arith.constant 0.000000e+00 : f32
    %52 = vector.broadcast %cst_27 : f32 to vector<1x256xf32>
    %53 = arith.maximumf %51, %52 : vector<1x256xf32>
    %cst_28 = arith.constant 9.99999974E-6 : f32
    %54 = vector.broadcast %cst_28 : f32 to vector<1x256xf32>
    %55 = arith.addf %53, %54 : vector<1x256xf32>
    %56 = math.rsqrt %55 : vector<1x256xf32>
    %57 = arith.mulf %38, %56 : vector<1x256xf32>
    %58 = arith.mulf %44, %57 : vector<1x256xf32>
    %59 = arith.subf %39, %58 : vector<1x256xf32>
    %60 = vector.broadcast %57 : vector<1x256xf32> to vector<8x256xf32>
    %61 = arith.mulf %37, %60 : vector<8x256xf32>
    %62 = vector.broadcast %59 : vector<1x256xf32> to vector<8x256xf32>
    %63 = arith.addf %61, %62 : vector<8x256xf32>
    %cst_29 = arith.constant 0.000000e+00 : f32
    %64 = vector.broadcast %cst_29 : f32 to vector<8x256xf32>
    %65 = arith.cmpf ogt, %63, %64 : vector<8x256xf32>
    %66 = vector.broadcast %40 : f32 to vector<8x256xf32>
    %67 = arith.mulf %66, %63 : vector<8x256xf32>
    %68 = arith.select %65, %63, %67 : vector<8x256xi1>, vector<8x256xf32>
    %69 = arith.truncf %68 : vector<8x256xf32> to vector<8x256xbf16>
    %c0_30 = arith.constant 0 : index
    %c0_31 = arith.constant 0 : index
    %70 = vector.load %arg9[%c0_30, %c0_31] : memref<256x128xbf16, #tpu.memory_space<vmem>>, vector<256x128xbf16>
    %cst_32 = arith.constant dense<0.000000e+00> : vector<8x128xf32>
    %71 = tpu.matmul %69, %70, %cst_32 {dimension_numbers = #tpu.dot_dimension_numbers<[1], [0], [0], [1], [0, 0, 1, 1], [], []>} : vector<8x256xbf16>, vector<256x128xbf16>, vector<8x128xf32> -> vector<8x128xf32>
    %c0_33 = arith.constant 0 : index
    %c0_34 = arith.constant 0 : index
    %72 = vector.load %arg10[%c0_33, %c0_34] : memref<1x128xf32, #tpu.memory_space<vmem>>, vector<1x128xf32>
    %73 = vector.broadcast %72 : vector<1x128xf32> to vector<8x128xf32>
    %74 = arith.addf %71, %73 : vector<8x128xf32>
    %75 = arith.negf %74 : vector<8x128xf32>
    %76 = math.exp %75 : vector<8x128xf32>
    %cst_35 = arith.constant 1.000000e+00 : f32
    %77 = vector.broadcast %cst_35 : f32 to vector<8x128xf32>
    %78 = arith.addf %77, %76 : vector<8x128xf32>
    %79 = arith.divf %77, %78 : vector<8x128xf32>
    %c0_36 = arith.constant 0 : index
    %c0_37 = arith.constant 0 : index
    %80 = vector.load %arg11[%c0_36, %c0_37] : memref<8x128xf32, #tpu.memory_space<vmem>>, vector<8x128xf32>
    tpu.vector_store %arg11[%c0_36, %c0_37], %79 {strides = array<i32>} : memref<8x128xf32, #tpu.memory_space<vmem>>, vector<8x128xf32>,
    return
  }
}

</mosaic_0001>

<bundles_post_ra>
// kernel: latternet_forward.1
= control target key start
LH: loop header
LB: loop body
LE: loop exit
PB: predicated region body
PF: predicated region fallthrough
CT: control target
= control target key end

     0   :  { %18 = vsyncpa [#allocation5], 0  ;;  %s1437_s0 = inlined_call_operand.hbm [shape: f32[8,11], index: 0, kind: input, shape index: {}]   ;;  %s1438_s1 = inlined_call_operand.hbm [shape: bf16[11,256], index: 1, kind: input, shape index: {}]   ;;  %s1439_s2 = inlined_call_operand.vmem [shape: f32[1,256], index: 2, kind: input, shape index: {}]   ;;  %s1440_s3 = inlined_call_operand.vmem [shape: f32[1,256], index: 3, kind: input, shape index: {}]   ;;  %s1441_s4 = inlined_call_operand.<no memory space> [shape: f32[1], index: 4, kind: input, shape index: {}]   ;;  %s1442_s5 = inlined_call_operand.hbm [shape: bf16[256,256], index: 5, kind: input, shape index: {}]   ;;  %s1443_s6 = inlined_call_operand.vmem [shape: f32[1,256], index: 6, kind: input, shape index: {}]   ;;  %s1444_s7 = inlined_call_operand.hbm [shape: f32[1,256], index: 7, kind: input, shape index: {}]   ;;  %s1445_s8 = inlined_call_operand.<no memory space> [shape: f32[1], index: 8, kind: input, shape index: {}]   ;;  %s1446_s9 = inlined_call_operand.hbm [shape: bf16[256,128], index: 9, kind: input, shape index: {}]   ;;  %s1447_s10 = inlined_call_operand.hbm [shape: f32[1,128], index: 10, kind: input, shape index: {}]   ;;  %s1448_s11 = inlined_call_operand.hbm [shape: f32[8,128], index: 11, kind: output, shape index: {}]  }
   0x1   :  { %19 = vsyncpa [#allocation8], 0 }
   0x2   :  { %20 = vsyncpa [#allocation11], 0 }
   0x3   :  { %21 = vsyncpa [#allocation14], 0  ;;  %s38_s19 = sshll.u32 %s1438_s1, 4  ;;  %s39_s19 = int_to_ptr.hbm [resolvable:$true] %s38_s19 }
   0x4   :  { %22 = vsyncpa [#allocation6], 0  ;;  %s1277_s20 = smov [#allocation7]   ;;  %s73_s24 = sshll.u32 %s1444_s7, 4  ;;  %s74_s24 = int_to_ptr.hbm [resolvable:$true] %s73_s24 }
   0x5   :  { %s40_s21 = sshll.u32 %s1277_s20, 4  ;;  %s1278_s25 = smov 128   ;;  %s41_s21 = int_to_ptr.vmem [resolvable:$true] %s40_s21 }
   0x6   :  { %s1279_s26 = smov 8   ;;  %s1280_s27 = smov [#allocation10]  }
   0x7   :  { %46 = dma.hbm_to_vmem [thread:$0]  %s39_s19, 256, %s41_s21, [#allocation8], %s1278_s25, %s1278_s25, %s1279_s26  }
   0x8   :  { %s75_s28 = sshll.u32 %s1280_s27, 4  ;;  %s28_s12 = sshll.u32 %s1437_s0, 4  ;;  %s76_s28 = int_to_ptr.vmem [resolvable:$true] %s75_s28  ;;  %s29_s12 = int_to_ptr.hbm [resolvable:$true] %s28_s12 }
   0x9   :  { %78 = dma.hbm_to_vmem [thread:$0]  %s74_s24, 32, %s76_s28, [#allocation11]  }
   0xa   :  { %s57_s14 = sshll.u32 %s1442_s5, 4  ;;  %s1281_s15 = smov [#allocation4]   ;;  %s58_s14 = int_to_ptr.hbm [resolvable:$true] %s57_s14 }
   0xb   :  { %s30_s16 = sshll.u32 %s1281_s15, 4  ;;  %s1282_s7 = smov [#allocation9]   ;;  %s31_s16 = int_to_ptr.vmem [resolvable:$true] %s30_s16 }
   0xc   :  { %33 = dma.hbm_to_vmem [thread:$0]  %s29_s12, 128, %s31_s16, [#allocation5]  }
   0xd   :  { %s59_s17 = sshll.u32 %s1282_s7, 4  ;;  %s85_s20 = sshll.u32 %s1446_s9, 4  ;;  %s60_s17 = int_to_ptr.vmem [resolvable:$true] %s59_s17  ;;  %s86_s20 = int_to_ptr.hbm [resolvable:$true] %s85_s20 }
   0xe   :  { %65 = dma.hbm_to_vmem [thread:$0]  %s58_s14, 4096, %s60_s17, [#allocation8], %s1278_s25, %s1278_s25, %s1279_s26  }
   0xf   :  { %s1283_s0 = smov [#allocation12]   ;;  %s99_s5 = sshll.u32 %s1447_s10, 4  ;;  %s100_s5 = int_to_ptr.hbm [resolvable:$true] %s99_s5 }
  0x10   :  { %s87_s21 = sshll.u32 %s1283_s0, 4  ;;  %s1284_s24 = smov 64   ;;  %s88_s21 = int_to_ptr.vmem [resolvable:$true] %s87_s21 }
  0x11   :  { %s1285_s27 = smov 4   ;;  %s1286_s28 = smov [#allocation13]  }
  0x12   :  { %93 = dma.hbm_to_vmem [thread:$0]  %s86_s20, 2048, %s88_s21, [#allocation11], %s1284_s24, %s1284_s24, %s1285_s27  }
  0x13   :  { %s101_s29 = sshll.u32 %s1286_s28, 4  ;;  %s102_s29 = int_to_ptr.vmem [resolvable:$true] %s101_s29 }
  0x14   :  { %104 = dma.hbm_to_vmem [thread:$0]  %s100_s5, 16, %s102_s29, [#allocation14]  }
  0x15   :  { %1267 = dma.done.wait [#allocation5], 128  }
  0x16   :  { %1268 = vsyncadd [#allocation5], 4294967168 }
  0x17   :  { %1269 = dma.done.wait [#allocation8], 4352  }
  0x18   :  { %1270 = vsyncadd [#allocation8], 4294962944 }
  0x19   :  { %1271 = dma.done.wait [#allocation11], 2080  }
  0x1a   :  { %1272 = vsyncadd [#allocation11], 4294965216 }
  0x1b   :  { %1273 = dma.done.wait [#allocation14], 16  }
  0x1c   :  { %1274 = vsyncadd [#allocation14], 4294967280  ;;  %vm146_vm0 = vcmask 1044480   ;;  %vm147_vm1 = vcmask 1045504   ;;  %v1287_v0 = vmov 65535   ;;  %v130_v8 = vld [vmem:[#allocation4] sm:$0xff] }
  0x1d   :  { %v148_v1 = vsel %vm146_vm0, 4294967295, %v1287_v0  ;;  %v823_v3 = vld [vmem:[#allocation7] sm:$0xf]  ;;  %v1025_v4 = vld [vmem:[#allocation7 + $0x4] sm:$0x30]  ;;  %v131_v12 = vpack.c.bf16 %v130_v8, %v130_v8  ;;  %vm142_vm2 = vcmask 89088  }
  0x1e   :  { %v149_v2 = vsel %vm147_vm1, %v148_v1, 0  ;;  %v1024_v5 = vld [vmem:[#allocation7 + $0x4] sm:$0xf]  ;;  %v824_v6 = vor.u32 %v1025_v4, %v823_v3  ;;  %v825_v7 = vld [vmem:[#allocation7 + $0x8] sm:$0x30]  ;;  %vm246_vm8 = vcmask 1040384  }
  0x1f   :  { %v828_v9 = vor.u32 %v1024_v5, %v825_v7  ;;  %v889_v13 = vld [vmem:[#allocation9 + $0x70] sm:$0xf]  ;;  %v1041_v14 = vld [vmem:[#allocation9 + $0x74] sm:$0xf0]  ;;  %v1040_v19 = vld [vmem:[#allocation9 + $0x74] sm:$0xf] }
  0x20   :  { %v151_v10 = vand.u32 %v824_v6, %v149_v2  ;;  %v953_v15 = vld [vmem:[#allocation9 + $0xf0] sm:$0xf]  ;;  %v890_v17 = vor.u32 %v1041_v14, %v889_v13  ;;  %v1057_v18 = vld [vmem:[#allocation9 + $0xf4] sm:$0xf0]  ;;  %v891_v20 = vld [vmem:[#allocation9 + $0x78] sm:$0xf0] }
  0x21   :  { %v154_v11 = vand.u32 %v828_v9, %v149_v2  ;;  %v954_v24 = vor.u32 %v1057_v18, %v953_v15  ;;  %v894_v25 = vor.u32 %v1040_v19, %v891_v20  ;;  %v1056_v26 = vld [vmem:[#allocation9 + $0xf4] sm:$0xf]  ;;  %v955_v27 = vld [vmem:[#allocation9 + $0xf8] sm:$0xf0]  ;;  %v881_v33 = vld [vmem:[#allocation9 + $0x60] sm:$0xf] }
  0x22   :  { %163 = vmatpush.bf16.msra.mxu0 %v151_v10  ;;  %473 = vmatpush.bf16.msra.mxu2 %v890_v17  ;;  %v958_v30 = vor.u32 %v1056_v26, %v955_v27  ;;  %v1039_v34 = vld [vmem:[#allocation9 + $0x64] sm:$0xf0]  ;;  %v945_v38 = vld [vmem:[#allocation9 + $0xe0] sm:$0xf]  ;;  %v1038_v43 = vld [vmem:[#allocation9 + $0x64] sm:$0xf] }
  0x23   :  { %176 = vmatpush.bf16.msra.mxu1 %v154_v11  ;;  %486 = vmatpush.bf16.msra.mxu3 %v954_v24  ;;  %v882_v37 = vor.u32 %v1039_v34, %v881_v33  ;;  %v1055_v39 = vld [vmem:[#allocation9 + $0xe4] sm:$0xf0]  ;;  %v883_v44 = vld [vmem:[#allocation9 + $0x68] sm:$0xf0]  ;;  %v1054_v48 = vld [vmem:[#allocation9 + $0xe4] sm:$0xf] }
  0x24   :  { %v946_v42 = vor.u32 %v1055_v39, %v945_v38  ;;  %v886_v47 = vor.u32 %v1038_v43, %v883_v44  ;;  %v947_v49 = vld [vmem:[#allocation9 + $0xe8] sm:$0xf0]  ;;  %v873_v53 = vld [vmem:[#allocation9 + $0x50] sm:$0xf]  ;;  %v1037_v54 = vld [vmem:[#allocation9 + $0x54] sm:$0xf0] }
  0x25   :  { %829 = vmatmul.msk.bf16.vlgmr.msra.gmra.mxu0 %vm142_vm2, %v131_v12  ;;  %v950_v52 = vor.u32 %v1054_v48, %v947_v49  ;;  %v874_v58 = vor.u32 %v1037_v54, %v873_v53  ;;  %v937_v59 = vld [vmem:[#allocation9 + $0xd0] sm:$0xf]  ;;  %v1053_v60 = vld [vmem:[#allocation9 + $0xd4] sm:$0xf0]  ;;  %v1036_v1 = vld [vmem:[#allocation9 + $0x54] sm:$0xf] }
  0x26   :  { %830 = vmatmul.msk.bf16.vlgmr.msra.gmra.mxu1 %vm142_vm2, %v131_v12  ;;  %499 = vmatpush.bf16.msrb.mxu0 %v894_v25  ;;  %v938_v0 = vor.u32 %v1053_v60, %v937_v59  ;;  %v875_v2 = vld [vmem:[#allocation9 + $0x58] sm:$0xf0]  ;;  %v1052_v6 = vld [vmem:[#allocation9 + $0xd4] sm:$0xf]  ;;  %v865_v11 = vld [vmem:[#allocation9 + $0x40] sm:$0xf] }
  0x27   :  { %512 = vmatpush.bf16.msrb.mxu1 %v958_v30  ;;  %474 = vmatpush.bf16.msra.mxu2 %v882_v37  ;;  %v878_v5 = vor.u32 %v1036_v1, %v875_v2  ;;  %v939_v7 = vld [vmem:[#allocation9 + $0xd8] sm:$0xf0]  ;;  %v1035_v12 = vld [vmem:[#allocation9 + $0x44] sm:$0xf0]  ;;  %v929_v17 = vld [vmem:[#allocation9 + $0xc0] sm:$0xf] }
  0x28   :  { %487 = vmatpush.bf16.msra.mxu3 %v946_v42  ;;  %v942_v10 = vor.u32 %v1052_v6, %v939_v7  ;;  %v866_v15 = vor.u32 %v1035_v12, %v865_v11  ;;  %v1051_v18 = vld [vmem:[#allocation9 + $0xc4] sm:$0xf0]  ;;  %v867_v24 = vld [vmem:[#allocation9 + $0x48] sm:$0xf0]  ;;  %v857_v33 = vld [vmem:[#allocation9 + $0x30] sm:$0xf] }
  0x29   :  { %v1033_v34 = vld [vmem:[#allocation9 + $0x34] sm:$0xf0]  ;;  %v921_v38 = vld [vmem:[#allocation9 + $0xb0] sm:$0xf]  ;;  %v1032_v42 = vld [vmem:[#allocation9 + $0x34] sm:$0xf] }
  0x2a   :  { %500 = vmatpush.bf16.msrb.mxu0 %v886_v47  ;;  %v858_v37 = vor.u32 %v1033_v34, %v857_v33  ;;  %v1049_v39 = vld [vmem:[#allocation9 + $0xb4] sm:$0xf0]  ;;  %v859_v43 = vld [vmem:[#allocation9 + $0x38] sm:$0xf0]  ;;  %v1048_v44 = vld [vmem:[#allocation9 + $0xb4] sm:$0xf] }
  0x2b   :  { %513 = vmatpush.bf16.msrb.mxu1 %v950_v52  ;;  %475 = vmatpush.bf16.msra.mxu2 %v874_v58  ;;  %v923_v47 = vld [vmem:[#allocation9 + $0xb8] sm:$0xf0]  ;;  %v913_v54 = vld [vmem:[#allocation9 + $0xa0] sm:$0xf]  ;;  %v1030_v58 = vld [vmem:[#allocation9 + $0x24] sm:$0xf] }
  0x2c   :  { %488 = vmatpush.bf16.msra.mxu3 %v938_v0  ;;  %v926_v49 = vor.u32 %v1048_v44, %v923_v47  ;;  %v851_v59 = vld [vmem:[#allocation9 + $0x28] sm:$0xf0]  ;;  %v841_v1 = vld [vmem:[#allocation9 + $0x10] sm:$0xf]  ;;  %v1029_v2 = vld [vmem:[#allocation9 + $0x14] sm:$0xf0] }
  0x2d   :  { %v1028_v6 = vld [vmem:[#allocation9 + $0x14] sm:$0xf]  ;;  %v843_v7 = vld [vmem:[#allocation9 + $0x18] sm:$0xf0]  ;;  %v833_v12 = vld [vmem:[#allocation9] sm:$0xf] }
  0x2e   :  { %501 = vmatpush.bf16.msrb.mxu0 %v878_v5  ;;  %v1045_v5 = vld [vmem:[#allocation9 + $0x94] sm:$0xf0]  ;;  %v907_v11 = vld [vmem:[#allocation9 + $0x98] sm:$0xf0]  ;;  %s808_s15 = sshll.u32 %s1448_s11, 4  ;;  %s809_s15 = int_to_ptr.hbm [resolvable:$true] %s808_s15 }
  0x2f   :  { %514 = vmatpush.bf16.msrb.mxu1 %v942_v10  ;;  %476 = vmatpush.bf16.msra.mxu2 %v866_v15  ;;  %v1044_v10 = vld [vmem:[#allocation9 + $0x94] sm:$0xf]  ;;  %v897_v15 = vld [vmem:[#allocation9 + $0x80] sm:$0xf] }
  0x33   :  { %477 = vmatpush.bf16.msra.mxu2 %v858_v37 }
  0xa2   :  { %v1367_v16 = vpop.f32.mrf.mxu0 }
  0xa3   :  { %v185_v21 = vrot.slane %v1367_v16, 4  ;;  %v199_v22 = vmul.f32 %v1367_v16, %v1367_v16  ;;  %v1372_v23 = vpop.f32.mrf.mxu1 }
  0xa4   :  { %v191_v28 = vrot.slane %v1372_v23, 4  ;;  %v200_v29 = vmul.f32 %v1372_v23, %v1372_v23 }
  0xa5   :  { %v186_v31 = vadd.f32 %v185_v21, %v1367_v16  ;;  %v201_v32 = vrot.slane %v199_v22, 4  ;;  %v930_v21 = vor.u32 %v1051_v18, %v929_v17  ;;  %v1043_v17 = vld [vmem:[#allocation9 + $0x84] sm:$0xf0] }
  0xa6   :  { %v192_v35 = vadd.f32 %v191_v28, %v1372_v23  ;;  %v207_v36 = vrot.slane %v200_v29, 4  ;;  %v1050_v28 = vld [vmem:[#allocation9 + $0xc4] sm:$0xf] }
  0xa7   :  { %v187_v40 = vrot.slane %v186_v31, 2  ;;  %v202_v41 = vadd.f32 %v201_v32, %v199_v22  ;;  %v1034_v22 = vld [vmem:[#allocation9 + $0x44] sm:$0xf]  ;;  %489 = vmatpush.bf16.msra.mxu3 %v930_v21 }
  0xa8   :  { %v193_v45 = vrot.slane %v192_v35, 2  ;;  %v208_v46 = vadd.f32 %v207_v36, %v200_v29  ;;  %v870_v27 = vor.u32 %v1034_v22, %v867_v24  ;;  %v931_v29 = vld [vmem:[#allocation9 + $0xc8] sm:$0xf0]  ;;  %v1026_v21 = vld [vmem:[#allocation9 + $0x4] sm:$0xf] }
  0xa9   :  { %v188_v50 = vadd.f32 %v187_v40, %v186_v31  ;;  %v203_v51 = vrot.slane %v202_v41, 2  ;;  %v934_v32 = vor.u32 %v1050_v28, %v931_v29  ;;  %v835_v22 = vld [vmem:[#allocation9 + $0x8] sm:$0xf0]  ;;  %v1042_v24 = vld [vmem:[#allocation9 + $0x84] sm:$0xf] }
  0xaa   :  { %v194_v55 = vadd.f32 %v193_v45, %v192_v35  ;;  %v209_v56 = vrot.slane %v208_v46, 2  ;;  %v167_v57 = vpop.f32.mrf.mxu0  ;;  %502 = vmatpush.bf16.msrb.mxu0 %v870_v27  ;;  %v899_v27 = vld [vmem:[#allocation9 + $0x88] sm:$0xf0] }
  0xab   :  { %v189_v61 = vrot.slane %v188_v50, 1  ;;  %v204_v62 = vadd.f32 %v203_v51, %v202_v41  ;;  %v180_v63 = vpop.f32.mrf.mxu1  ;;  %515 = vmatpush.bf16.msrb.mxu1 %v934_v32  ;;  %v922_v41 = vor.u32 %v1049_v39, %v921_v38  ;;  %v1031_v51 = vld [vmem:[#allocation9 + $0x24] sm:$0xf0]  ;;  %v902_v29 = vor.u32 %v1042_v24, %v899_v27  ;;  %v1072_v24 = vld [vmem:[#allocation12 + $0x70] sm:$0xff] }
  0xac   :  { %v195_v3 = vrot.slane %v194_v55, 1  ;;  %v210_v4 = vadd.f32 %v209_v56, %v208_v46  ;;  %v862_v46 = vor.u32 %v1032_v42, %v859_v43  ;;  %v915_v63 = vld [vmem:[#allocation9 + $0xa8] sm:$0xf0]  ;;  %v182_v42 = vld [vmem:[%s1439_s2] sm:$0x3] }
  0xad   :  { %v190_v8 = vadd.f32 %v189_v61, %v188_v50  ;;  %v205_v9 = vrot.slane %v204_v62, 1  ;;  %490 = vmatpush.bf16.msra.mxu3 %v922_v41  ;;  %v849_v50 = vld [vmem:[#allocation9 + $0x20] sm:$0xf]  ;;  %v854_v61 = vor.u32 %v1030_v58, %v851_v59 }
  0xae   :  { %v196_v13 = vadd.f32 %v195_v3, %v194_v55  ;;  %v211_v14 = vrot.slane %v210_v4, 1  ;;  %503 = vmatpush.bf16.msrb.mxu0 %v862_v46  ;;  %v850_v53 = vor.u32 %v1031_v51, %v849_v50  ;;  %v1047_v55 = vld [vmem:[#allocation9 + $0xa4] sm:$0xf0]  ;;  %v905_v3 = vld [vmem:[#allocation9 + $0x90] sm:$0xf] }
  0xaf   :  { %v1379_v19 = vmul.f32 0.125, %v190_v8  ;;  %v206_v20 = vadd.f32 %v205_v9, %v204_v62  ;;  %516 = vmatpush.bf16.msrb.mxu1 %v926_v49  ;;  %v914_v57 = vor.u32 %v1047_v55, %v913_v54  ;;  %v1046_v62 = vld [vmem:[#allocation9 + $0xa4] sm:$0xf]  ;;  %v906_v8 = vor.u32 %v1045_v5, %v905_v3  ;;  %v183_v51 = vld [vmem:[%s1440_s3] sm:$0x3] }
  0xb0   :  { %v1381_v25 = vmul.f32 0.125, %v196_v13  ;;  %v212_v26 = vadd.f32 %v211_v14, %v210_v4  ;;  %478 = vmatpush.bf16.msra.mxu2 %v850_v53  ;;  %v918_v0 = vor.u32 %v1046_v62, %v915_v63  ;;  %v842_v4 = vor.u32 %v1029_v2, %v841_v1  ;;  %v1027_v14 = vld [vmem:[#allocation9 + $0x4] sm:$0xf0] }
  0xb1   :  { %v213_v30 = vmul.f32 0.125, %v206_v20  ;;  %v215_v31 = vmul.f32 %v1379_v19, %v1379_v19  ;;  %491 = vmatpush.bf16.msra.mxu3 %v914_v57  ;;  %v846_v9 = vor.u32 %v1028_v6, %v843_v7  ;;  %v910_v13 = vor.u32 %v1044_v10, %v907_v11  ;;  %v1073_v10 = vld [vmem:[#allocation12 + $0x78] sm:$0xff] }
  0xb2   :  { %v214_v35 = vmul.f32 0.125, %v212_v26  ;;  %v216_v36 = vmul.f32 %v1381_v25, %v1381_v25  ;;  %504 = vmatpush.bf16.msrb.mxu0 %v854_v61  ;;  %v834_v18 = vor.u32 %v1027_v14, %v833_v12  ;;  %v898_v20 = vor.u32 %v1043_v17, %v897_v15 }
  0xb3   :  { %v217_v40 = vsub.f32 %v213_v30, %v215_v31  ;;  %517 = vmatpush.bf16.msrb.mxu1 %v918_v0  ;;  %v838_v26 = vor.u32 %v1026_v21, %v835_v22  ;;  %v1064_v22 = vld [vmem:[#allocation12 + $0x30] sm:$0xff] }
  0xb4   :  { %v218_v45 = vsub.f32 %v214_v35, %v216_v36  ;;  %479 = vmatpush.bf16.msra.mxu2 %v842_v4 }
  0xb5   :  { %v219_v48 = vmax.f32 %v217_v40, 0.0  ;;  %492 = vmatpush.bf16.msra.mxu3 %v906_v8 }
  0xb6   :  { %v220_v52 = vmax.f32 %v218_v45, 0.0  ;;  %505 = vmatpush.bf16.msrb.mxu0 %v846_v9  ;;  %v1065_v9 = vld [vmem:[#allocation12 + $0x38] sm:$0xff] }
  0xb7   :  { %v1387_v56 = vadd.f32 1e-05, %v219_v48  ;;  %518 = vmatpush.bf16.msrb.mxu1 %v910_v13 }
  0xb8   :  { %v222_v60 = vadd.f32 1e-05, %v220_v52  ;;  %480 = vmatpush.bf16.msra.mxu2 %v834_v18 }
  0xb9   :  { %1087 = vrsqrt.f32 %v1387_v56  ;;  %493 = vmatpush.bf16.msra.mxu3 %v898_v20  ;;  %vm229_vm7 = vweird.f32 %v1387_v56 }
  0xba   :  { %1089 = vrsqrt.f32 %v222_v60  ;;  %506 = vmatpush.bf16.msrb.mxu0 %v838_v26  ;;  %vm239_vm5 = vweird.f32 %v222_v60 }
  0xbb   :  { %519 = vmatpush.bf16.msrb.mxu1 %v902_v29 }
  0xbc   :  { %755 = vmatpush.bf16.msrb.mxu2 %v1065_v9 }
  0xbd   :  { %768 = vmatpush.bf16.msrb.mxu3 %v1073_v10 }
  0xbf   :  { %v1088_v28 = vpop.eup %1087 }
  0xc0   :  { %v1090_v30 = vpop.eup %1089  ;;  %v224_v31 = vmul.f32 %v1088_v28, %v1387_v56  ;;  %vm230_vm4 = vweird.f32 %v1088_v28  ;;  %756 = vmatpush.bf16.msrb.mxu2 %v1064_v22 }
  0xc1   :  { %v234_v32 = vmul.f32 %v1090_v30, %v222_v60  ;;  %vm240_vm3 = vweird.f32 %v1090_v30  ;;  %vm231_vm9 = vmor %vm229_vm7, %vm230_vm4  ;;  %769 = vmatpush.bf16.msrb.mxu3 %v1072_v24 }
  0xc2   :  { %v225_v33 = vmul.f32 %v1088_v28, %v224_v31  ;;  %vm241_vm6 = vmor %vm239_vm5, %vm240_vm3 }
  0xc3   :  { %v235_v34 = vmul.f32 %v1090_v30, %v234_v32 }
  0xc4   :  { %v226_v35 = vmul.f32 0.5, %v225_v33 }
  0xc5   :  { %v236_v36 = vmul.f32 0.5, %v235_v34 }
  0xc6   :  { %v227_v37 = vsub.f32 1.5, %v226_v35 }
  0xc7   :  { %v237_v38 = vsub.f32 1.5, %v236_v36  ;;  %v1063_v36 = vld [vmem:[#allocation12 + $0x28] sm:$0xff] }
  0xc8   :  { %v228_v39 = vmul.f32 %v1088_v28, %v227_v37  ;;  %v1071_v37 = vld [vmem:[#allocation12 + $0x68] sm:$0xff]  ;;  %757 = vmatpush.bf16.msrb.mxu2 %v1063_v36  ;;  %v616_v36 = vstv %s1445_s8  ;;  %s1288_s8 = smov [#allocation15]  }
  0xc9   :  { %v238_v40 = vmul.f32 %v1090_v30, %v237_v38  ;;  %770 = vmatpush.bf16.msrb.mxu3 %v1071_v37  ;;  %s806_s1 = sshll.u32 %s1288_s8, 4  ;;  %s807_s1 = int_to_ptr.vmem [resolvable:$true] %s806_s1 }
  0xca   :  { %v232_v44 = vsel %vm231_vm9, %v1088_v28, %v228_v39 }
  0xcb   :  { %v242_v41 = vsel %vm241_vm6, %v1090_v30, %v238_v40 }
  0xcc   :  { %v245_v43 = vrot.slane %v242_v41, 7 }
  0xce   :  { %v247_v45 = vsel %vm246_vm8, %v232_v44, %v245_v43 }
  0xcf   :  { %v249_v46 = vmul.f32 %v247_v45, %v182_v42 }
  0xd1   :  { %v252_v47 = vperm.slane %v249_v46, 1  ;;  %v251_v48 = vperm.slane %v249_v46, 0  ;;  %v1062_v46 = vld [vmem:[#allocation12 + $0x20] sm:$0xff] }
  0xd2   :  { %758 = vmatpush.bf16.msrb.mxu2 %v1062_v46 }
  0xd3   :  { %v256_v49 = vmul.f32 %v252_v47, %v1381_v25  ;;  %v255_v52 = vmul.f32 %v251_v48, %v1379_v19  ;;  %v264_v55 = vmul.f32 %v252_v47, %v1372_v23  ;;  %v263_v56 = vmul.f32 %v251_v48, %v1367_v16  ;;  %v1070_v47 = vld [vmem:[#allocation12 + $0x60] sm:$0xff] }
  0xd4   :  { %v274_v25 = vstv %s1441_s4  ;;  %771 = vmatpush.bf16.msrb.mxu3 %v1070_v47 }
  0xd5   :  { %v259_v50 = vrot.slane %v256_v49, 7 }
  0xd7   :  { %v260_v53 = vsel %vm246_vm8, %v255_v52, %v259_v50 }
  0xd8   :  { %v262_v54 = vsub.f32 %v183_v51, %v260_v53 }
  0xda   :  { %v266_v57 = vperm.slane %v262_v54, 0  ;;  %v267_v58 = vperm.slane %v262_v54, 1  ;;  %v1061_v54 = vld [vmem:[#allocation12 + $0x18] sm:$0xff] }
  0xdb   :  { %759 = vmatpush.bf16.msrb.mxu2 %v1061_v54 }
  0xdc   :  { %v270_v59 = vadd.f32 %v266_v57, %v263_v56  ;;  %v271_v60 = vadd.f32 %v267_v58, %v264_v55  ;;  %v1069_v55 = vld [vmem:[#allocation12 + $0x58] sm:$0xff] }
  0xdd   :  { %772 = vmatpush.bf16.msrb.mxu3 %v1069_v55 }
  0xde   :  { %vm272_vm10 = vcmp.gt.f32.partialorder %v270_v59, 0.0  ;;  %v275_v61 = vmul.f32 %v274_v25, %v270_v59  ;;  %vm273_vm11 = vcmp.gt.f32.partialorder %v271_v60, 0.0  ;;  %v276_v62 = vmul.f32 %v274_v25, %v271_v60  ;;  %v1060_v25 = vld [vmem:[#allocation12 + $0x10] sm:$0xff] }
  0xdf   :  { %760 = vmatpush.bf16.msrb.mxu2 %v1060_v25 }
  0xe0   :  { %v277_v19 = vsel %vm272_vm10, %v270_v59, %v275_v61  ;;  %v278_v63 = vsel %vm273_vm11, %v271_v60, %v276_v62  ;;  %v1068_v59 = vld [vmem:[#allocation12 + $0x50] sm:$0xff]  ;;  %v1059_v62 = vld [vmem:[#allocation12 + $0x8] sm:$0xff] }
  0xe1   :  { %v279_v0 = vpack.c.bf16 %v277_v19, %v277_v19  ;;  %v280_v1 = vpack.c.bf16 %v278_v63, %v278_v63  ;;  %773 = vmatpush.bf16.msrb.mxu3 %v1068_v59  ;;  %v1067_v19 = vld [vmem:[#allocation12 + $0x48] sm:$0xff] }
  0xe3   :  { %481 = vmatmul.bf16.vlgmr.msra.gmra.mxu2 %v279_v0  ;;  %494 = vmatmul.bf16.vlgmr.msra.gmra.mxu3 %v280_v1 }
  0xe4   :  { %507 = vmatmul.bf16.vlgmr.msrb.gmra.mxu0 %v279_v0  ;;  %520 = vmatmul.bf16.vlgmr.msrb.gmra.mxu1 %v280_v1  ;;  %v1058_v1 = vld [vmem:[#allocation12] sm:$0xff] }
  0xe5   :  { %761 = vmatpush.bf16.msrb.mxu2 %v1059_v62  ;;  %774 = vmatpush.bf16.msrb.mxu3 %v1067_v19 }
  0xe9   :  { %762 = vmatpush.bf16.msrb.mxu2 %v1058_v1 }
 0x161   :  { %v508_v16 = vpop.f32.mrf.mxu0  ;;  %v521_v23 = vpop.f32.mrf.mxu1 }
 0x162   :  { %v1407_v2 = vadd.f32 %v521_v23, %v508_v16  ;;  %v1066_v16 = vld [vmem:[#allocation12 + $0x40] sm:$0xff] }
 0x163   :  { %775 = vmatpush.bf16.msrb.mxu3 %v1066_v16 }
 0x164   :  { %v534_v3 = vrot.slane %v1407_v2, 4  ;;  %v543_v4 = vmul.f32 %v1407_v2, %v1407_v2 }
 0x166   :  { %v535_v5 = vadd.f32 %v534_v3, %v1407_v2  ;;  %v550_v6 = vrot.slane %v543_v4, 4  ;;  %v482_v7 = vpop.f32.mrf.mxu2  ;;  %v495_v8 = vpop.f32.mrf.mxu3 }
 0x167   :  { %v1413_v11 = vadd.f32 %v495_v8, %v482_v7 }
 0x168   :  { %v536_v12 = vrot.slane %v535_v5, 2  ;;  %v551_v13 = vadd.f32 %v550_v6, %v543_v4 }
 0x169   :  { %v528_v14 = vrot.slane %v1413_v11, 4  ;;  %v542_v15 = vmul.f32 %v1413_v11, %v1413_v11  ;;  %v510_v17 = vpop.f32.mrf.mxu0  ;;  %v523_v18 = vpop.f32.mrf.mxu1 }
 0x16a   :  { %v537_v20 = vadd.f32 %v536_v12, %v535_v5  ;;  %v552_v21 = vrot.slane %v551_v13, 2 }
 0x16b   :  { %v529_v26 = vadd.f32 %v528_v14, %v1413_v11  ;;  %v544_v27 = vrot.slane %v542_v15, 4 }
 0x16c   :  { %v538_v28 = vrot.slane %v537_v20, 1  ;;  %v553_v29 = vadd.f32 %v552_v21, %v551_v13 }
 0x16d   :  { %v530_v30 = vrot.slane %v529_v26, 2  ;;  %v545_v31 = vadd.f32 %v544_v27, %v542_v15  ;;  %v525_v15 = vld [vmem:[%s1443_s6] sm:$0x3] }
 0x16e   :  { %v539_v32 = vadd.f32 %v538_v28, %v537_v20  ;;  %v554_v33 = vrot.slane %v553_v29, 1  ;;  %v484_v34 = vpop.f32.mrf.mxu2  ;;  %v497_v35 = vpop.f32.mrf.mxu3 }
 0x16f   :  { %v531_v38 = vadd.f32 %v530_v30, %v529_v26  ;;  %v546_v39 = vrot.slane %v545_v31, 2 }
 0x170   :  { %v1419_v40 = vmul.f32 0.125, %v539_v32  ;;  %v555_v41 = vadd.f32 %v554_v33, %v553_v29  ;;  %v526_v29 = vld [vmem:[#allocation10] sm:$0x3] }
 0x171   :  { %v532_v42 = vrot.slane %v531_v38, 1  ;;  %v547_v43 = vadd.f32 %v546_v39, %v545_v31 }
 0x172   :  { %v557_v44 = vmul.f32 0.125, %v555_v41  ;;  %v559_v45 = vmul.f32 %v1419_v40, %v1419_v40 }
 0x173   :  { %v533_v48 = vadd.f32 %v532_v42, %v531_v38  ;;  %v548_v49 = vrot.slane %v547_v43, 1 }
 0x174   :  { %v561_v50 = vsub.f32 %v557_v44, %v559_v45 }
 0x175   :  { %v540_v51 = vmul.f32 0.125, %v533_v48  ;;  %v549_v52 = vadd.f32 %v548_v49, %v547_v43 }
 0x176   :  { %v563_v53 = vmax.f32 %v561_v50, 0.0 }
 0x177   :  { %v556_v56 = vmul.f32 0.125, %v549_v52  ;;  %v558_v57 = vmul.f32 %v540_v51, %v540_v51 }
 0x178   :  { %v565_v58 = vadd.f32 1e-05, %v563_v53 }
 0x179   :  { %v560_v60 = vsub.f32 %v556_v56, %v558_v57 }
 0x17a   :  { %1091 = vrsqrt.f32 %v565_v58  ;;  %vm582_vm13 = vweird.f32 %v565_v58 }
 0x17b   :  { %v562_v61 = vmax.f32 %v560_v60, 0.0 }
 0x17d   :  { %v564_v63 = vadd.f32 1e-05, %v562_v61 }
 0x17f   :  { %1093 = vrsqrt.f32 %v564_v63  ;;  %vm572_vm0 = vweird.f32 %v564_v63 }
 0x180   :  { %v1092_v0 = vpop.eup %1091 }
 0x181   :  { %v577_v23 = vmul.f32 %v1092_v0, %v565_v58  ;;  %vm583_vm12 = vweird.f32 %v1092_v0 }
 0x182   :  { %vm584_vm14 = vmor %vm582_vm13, %vm583_vm12 }
 0x183   :  { %v578_v3 = vmul.f32 %v1092_v0, %v577_v23 }
 0x185   :  { %v1094_v4 = vpop.eup %1093  ;;  %v579_v5 = vmul.f32 0.5, %v578_v3 }
 0x186   :  { %v567_v6 = vmul.f32 %v1094_v4, %v564_v63  ;;  %vm573_vm15 = vweird.f32 %v1094_v4 }
 0x187   :  { %v580_v7 = vsub.f32 1.5, %v579_v5  ;;  %vm574_vm1 = vmor %vm572_vm0, %vm573_vm15 }
 0x188   :  { %v568_v8 = vmul.f32 %v1094_v4, %v567_v6 }
 0x189   :  { %v581_v9 = vmul.f32 %v1092_v0, %v580_v7 }
 0x18a   :  { %v569_v10 = vmul.f32 0.5, %v568_v8 }
 0x18b   :  { %v585_v13 = vsel %vm584_vm14, %v1092_v0, %v581_v9 }
 0x18c   :  { %v570_v12 = vsub.f32 1.5, %v569_v10  ;;  %v588_v17 = vrot.slane %v585_v13, 7 }
 0x18e   :  { %v571_v14 = vmul.f32 %v1094_v4, %v570_v12 }
 0x190   :  { %v575_v18 = vsel %vm574_vm1, %v1094_v4, %v571_v14 }
 0x191   :  { %v589_v20 = vsel %vm246_vm8, %v575_v18, %v588_v17 }
 0x192   :  { %v591_v21 = vmul.f32 %v589_v20, %v525_v15 }
 0x194   :  { %v593_v22 = vperm.slane %v591_v21, 0  ;;  %v594_v24 = vperm.slane %v591_v21, 1 }
 0x196   :  { %v598_v26 = vmul.f32 %v594_v24, %v1419_v40  ;;  %v597_v27 = vmul.f32 %v593_v22, %v540_v51  ;;  %v605_v32 = vmul.f32 %v593_v22, %v1413_v11  ;;  %v606_v34 = vmul.f32 %v594_v24, %v1407_v2  ;;  %v1086_v11 = vld [vmem:[#allocation13] ss:$0 sm:$0xff] }
 0x198   :  { %v601_v28 = vrot.slane %v598_v26, 7 }
 0x19a   :  { %v602_v30 = vsel %vm246_vm8, %v597_v27, %v601_v28 }
 0x19b   :  { %v604_v31 = vsub.f32 %v526_v29, %v602_v30 }
 0x19d   :  { %v608_v33 = vperm.slane %v604_v31, 0  ;;  %v609_v35 = vperm.slane %v604_v31, 1 }
 0x19f   :  { %v612_v37 = vadd.f32 %v608_v33, %v605_v32  ;;  %v613_v38 = vadd.f32 %v609_v35, %v606_v34 }
 0x1a1   :  { %vm614_vm2 = vcmp.gt.f32.partialorder %v612_v37, 0.0  ;;  %v617_v39 = vmul.f32 %v616_v36, %v612_v37  ;;  %vm615_vm3 = vcmp.gt.f32.partialorder %v613_v38, 0.0  ;;  %v618_v40 = vmul.f32 %v616_v36, %v613_v38 }
 0x1a3   :  { %v619_v41 = vsel %vm614_vm2, %v612_v37, %v617_v39  ;;  %v620_v42 = vsel %vm615_vm3, %v613_v38, %v618_v40 }
 0x1a4   :  { %v621_v43 = vpack.c.bf16 %v619_v41, %v619_v41  ;;  %v622_v44 = vpack.c.bf16 %v620_v42, %v620_v42 }
 0x1a6   :  { %763 = vmatmul.bf16.vlgmr.msrb.gmra.mxu2 %v621_v43  ;;  %776 = vmatmul.bf16.vlgmr.msrb.gmra.mxu3 %v622_v44 }
 0x229   :  { %v764_v45 = vpop.f32.mrf.mxu2  ;;  %v777_v2 = vpop.f32.mrf.mxu3 }
 0x22a   :  { %v765_v46 = vadd.f32 %v1086_v11, %v764_v45 }
 0x22c   :  { %v778_v47 = vadd.f32 %v777_v2, %v765_v46 }
 0x22e   :  { %v1023_v48 = vmul.f32 -1.442695, %v778_v47 }
 0x230   :  { %1095 = vpow2.f32 %v1023_v48 }
 0x231   :  { %v766_v49 = vpop.f32.mrf.mxu2  ;;  %v779_v50 = vpop.f32.mrf.mxu3 }
 0x236   :  { %v1096_v51 = vpop.eup %1095 }
 0x237   :  { %v784_v52 = vadd.f32 1.0, %v1096_v51 }
 0x239   :  { %1097 = vrcp.f32 %v784_v52  ;;  %v796_v56 = vand.u32 2147483648, %v784_v52  ;;  %v794_v58 = vand.u32 2147483647, %v784_v52  ;;  %vm790_vm5 = vweird.f32 %v784_v52 }
 0x23b   :  { %v797_v59 = vor.u32 1.1754944e-38, %v796_v56  ;;  %vm795_vm7 = vcmp.eq.f32.partialorder %v794_v58, 8.507059e+37 }
 0x23f   :  { %v1098_v53 = vpop.eup %1097 }
 0x240   :  { %v786_v54 = vmul.f32 %v1098_v53, %v784_v52  ;;  %vm791_vm4 = vweird.f32 %v1098_v53 }
 0x241   :  { %vm792_vm6 = vmor %vm790_vm5, %vm791_vm4 }
 0x242   :  { %v787_v55 = vsub.f32 1.0, %v786_v54 }
 0x244   :  { %v788_v57 = vmul.f32 %v1098_v53, %v787_v55 }
 0x246   :  { %v789_v25 = vadd.f32 %v1098_v53, %v788_v57 }
 0x248   :  { %v793_v60 = vsel %vm792_vm6, %v1098_v53, %v789_v25 }
 0x249   :  { %v798_v61 = vsel %vm795_vm7, %v797_v59, %v793_v60 }
 0x24a   :  { %800 = vst [vmem:[#allocation15] sm:$0xff] %v798_v61 }
 0x24b   :  { %811 = dma.vmem_to_hbm [thread:$0]  %s807_s1, 128, %s809_s15, [#allocation6]  }
 0x24c   :  { %1275 = dma.done.wait [#allocation6], 128  }
 0x24d   :  { %1276 = vsyncadd [#allocation6], 4294967168 }
 0x24e   :  { %816 = vsyncpa [#allocation5], 1 }
 0x24f   :  { %817 = vsyncpa [#allocation8], 1 }
 0x250   :  { %818 = vsyncpa [#allocation11], 1 }
 0x251   :  { %819 = vsyncpa [#allocation14], 1 }
 0x252   :  { %820 = vsyncpa [#allocation6], 1 }

</bundles_post_ra>
